<compile_context>
chip_gen: v7x
topology: tpu7x:2x2x1
jax: 0.10.0
libtpu: 0.0.40
codegen_flags: <defaults>
</compile_context>

<pallas_src>
import functools

import jax
import jax.numpy as jnp
from jax.experimental import pallas as pl
from jax.experimental.pallas import tpu as pltpu

BN_EPS = 1e-5


def _se_kernel(x_ref, w1f_ref, b1_ref, w2t_ref, o_ref, *, inv_hw):
    # x_ref / o_ref: (Nb, C, HW) block for Nb batch elements.
    x = x_ref[...]                                           # native dtype

    # --- squeeze: global average pool (f32 sum, one reciprocal multiply) -----
    pooled = jnp.sum(x, axis=2, dtype=jnp.float32) * inv_hw  # (Nb, C) f32

    # --- excitation: fused (conv1x1 + BN) -> ReLU6 ----------------------------
    h = jnp.dot(pooled, w1f_ref[...],
                preferred_element_type=jnp.float32) + b1_ref[...]  # (Nb, Cmid)
    h = jnp.clip(h, 0.0, 6.0)                                # ReLU6

    # --- 1x1 conv back to C channels (no bias) + HardSigmoid ------------------
    s = jnp.dot(h, w2t_ref[...], preferred_element_type=jnp.float32)  # (Nb, C)
    att = jnp.clip(s + 3.0, 0.0, 6.0) * (1.0 / 6.0)          # (Nb, C) f32

    # --- scale input in native dtype (avoids a full-size f32 temp) -----------
    o_ref[...] = (x * att.astype(x.dtype)[:, :, None]).astype(o_ref.dtype)


def _tpu_vmem_and_cores():
    """Return (per-core VMEM bytes, TensorCores per chip) with safe fallbacks."""
    try:
        vmem = int(pltpu.get_tpu_info().vmem_capacity_bytes)
    except Exception:
        vmem = 64 << 20                      # conservative (v7x-sized) default
    # v7x: 64 MiB VMEM / 2 TCs per chip; v5e/v6e: 128 MiB / 1 TC.
    cores = 2 if vmem <= (64 << 20) else 1
    return vmem, cores


def _pick_nb(N, per_n_bytes, budget, num_cores):
    """Pick batch elements per grid step: ~2-8 MiB blocks, several steps per
    TensorCore, and a grid length that is a multiple of the core count."""
    min_steps = 4 * num_cores
    target = 4 << 20
    divisors = [d for d in range(1, N + 1) if N % d == 0]
    fitting = [d for d in divisors if 4 * d * per_n_bytes <= budget] or [1]

    def score(d):
        g = N // d
        block = d * per_n_bytes
        s = 0
        if num_cores > 1 and g % num_cores == 0:
            s += 4                            # equal work on both TCs (v7x)
        if g >= min_steps:
            s += 2                            # enough steps for DMA overlap
        if (2 << 20) <= block <= (8 << 20):
            s += 2                            # past the tiling knee, not huge
        elif block >= (1 << 20):
            s += 1
        return (s, -abs(block - target))      # tie-break: closest to ~4 MiB

    return max(fitting, key=score)


def se_layer_m(x, w1, bn_gamma, bn_beta, bn_mean, bn_var, w2):
    """x: (N, C, H, W) NCHW.  w1: (Cmid, C), w2: (C, Cmid)."""
    N, C, H, W = x.shape
    Cmid = w1.shape[0]
    HW = H * W

    # No lane padding: blocks cover the full C and HW dims, so the (8,128)
    # divisibility rule does not apply; a trailing partial 128-lane vreg is
    # just a masked store.  This avoids two extra HBM passes (pad + slice).
    x3 = x.reshape(N, C, HW)

    # Fold eval-mode BatchNorm into the first 1x1 conv:
    #   BN(pooled @ w1.T) = pooled @ (w1.T * scale) + (beta - mean * scale)
    scale = bn_gamma * jax.lax.rsqrt(bn_var + BN_EPS)        # (Cmid,)
    w1f = jnp.transpose(w1) * scale[None, :]                 # (C, Cmid)
    b1 = (bn_beta - bn_mean * scale).reshape(1, Cmid)        # (1, Cmid)
    w2t = jnp.transpose(w2)                                  # (Cmid, C)

    # --- generation-aware VMEM budget and grid sizing -------------------------
    vmem_cap, num_cores = _tpu_vmem_and_cores()
    budget = (vmem_cap * 3) // 4          # 48 MiB on v7x, 96 MiB on v5e/v6e
    hard_cap = vmem_cap - (8 << 20)       # leave headroom for Mosaic scratch

    itemsize = x.dtype.itemsize
    per_n_bytes = C * HW * itemsize       # one batch element (input OR output)
    if 4 * per_n_bytes > hard_cap:
        # TODO(synk): add an HW-chunked two-pass fallback (pool pass + scale
        # pass) for batch elements too large to double-buffer in VMEM.
        raise ValueError(
            f"SELayerM Pallas kernel: one batch element ({per_n_bytes} B) is "
            f"too large to double-buffer in VMEM ({vmem_cap} B per core).")

    Nb = _pick_nb(N, per_n_bytes, budget, num_cores)
    grid_n = N // Nb

    weight_bytes = (w1f.size + b1.size + w2t.size) * 4
    vmem_need = 4 * Nb * per_n_bytes + 2 * weight_bytes + (4 << 20)
    vmem_limit = int(min(max(vmem_need, 32 << 20), hard_cap))

    cost = pl.CostEstimate(
        flops=int(2 * N * C * Cmid * 2 + N * C * HW),
        transcendentals=0,
        bytes_accessed=int(2 * N * C * HW * itemsize + weight_bytes),
    )

    full = lambda shape: pl.BlockSpec(shape, lambda i: (0,) * len(shape))

    out = pl.pallas_call(
        functools.partial(_se_kernel, inv_hw=1.0 / HW),
        out_shape=jax.ShapeDtypeStruct((N, C, HW), x.dtype),
        grid_spec=pltpu.PrefetchScalarGridSpec(
            num_scalar_prefetch=0,
            grid=(grid_n,),
            in_specs=[
                pl.BlockSpec((Nb, C, HW), lambda i: (i, 0, 0)),   # x
                full((C, Cmid)),                                  # fused w1^T (BN folded)
                full((1, Cmid)),                                  # fused bias
                full((Cmid, C)),                                  # w2^T
            ],
            out_specs=pl.BlockSpec((Nb, C, HW), lambda i: (i, 0, 0)),
        ),
        compiler_params=pltpu.CompilerParams(
            dimension_semantics=("parallel",),
            vmem_limit_bytes=vmem_limit),
        cost_estimate=cost,
    )(x3, w1f, b1, w2t)

    return out.reshape(N, C, H, W)


def se_layer_m_ref(x, w1, bn_gamma, bn_beta, bn_mean, bn_var, w2):
    """Pure-JAX reference for correctness checking."""
    pooled = jnp.mean(x, axis=(2, 3))                        # (N, C)
    h = pooled @ w1.T                                        # (N, Cmid)
    h = (h - bn_mean) * bn_gamma / jnp.sqrt(bn_var + BN_EPS) + bn_beta
    h = jnp.clip(h, 0.0, 6.0)
    s = h @ w2.T                                             # (N, C)
    att = jnp.clip(s + 3.0, 0.0, 6.0) / 6.0
    return x * att[:, :, None, None]


if __name__ == "__main__":
    N, C, H, W = 2, 8, 16, 16
    reduction = 4
    Cmid = C // reduction

    key = jax.random.PRNGKey(0)
    k_x, k_w1, k_w2, k_g, k_b = jax.random.split(key, 5)

    x = jax.random.normal(k_x, (N, C, H, W), dtype=jnp.float32)

    # Conv2d(C -> Cmid, 1x1, norm='bn') : no conv bias (folded into BN).
    w1 = jax.random.normal(k_w1, (Cmid, C), dtype=jnp.float32) * 0.2
    bn_gamma = 1.0 + 0.1 * jax.random.normal(k_g, (Cmid,), dtype=jnp.float32)
    bn_beta = 0.1 * jax.random.normal(k_b, (Cmid,), dtype=jnp.float32)
    bn_mean = jnp.zeros((Cmid,), dtype=jnp.float32)   # BN running-stat defaults
    bn_var = jnp.ones((Cmid,), dtype=jnp.float32)

    # Conv2d(Cmid -> C, 1x1, bias=False)
    w2 = jax.random.normal(k_w2, (C, Cmid), dtype=jnp.float32) * 0.2

    out = se_layer_m(x, w1, bn_gamma, bn_beta, bn_mean, bn_var, w2)
    out = jax.block_until_ready(out)

    ref = se_layer_m_ref(x, w1, bn_gamma, bn_beta, bn_mean, bn_var, w2)
    assert out.shape == (N, C, H, W)
    assert jnp.allclose(out, ref, atol=1e-4, rtol=1e-4)

    print("KERNEL_OK")
</pallas_src>

<mosaic_0001>
module attributes {stable_mosaic.version = 11 : i64} {
  func.func @_se_kernel(%arg0: i32, %arg1: memref<1x8x256xf32, #tpu.memory_space<vmem>>, %arg2: memref<8x2xf32, #tpu.memory_space<vmem>>, %arg3: memref<1x2xf32, #tpu.memory_space<vmem>>, %arg4: memref<2x8xf32, #tpu.memory_space<vmem>>, %arg5: memref<1x8x256xf32, #tpu.memory_space<vmem>>) attributes {dimension_semantics = [#tpu.dimension_semantics<parallel>], iteration_bounds = array<i64: 2>, scalar_prefetch = 0 : i64, scratch_operands = 0 : i64, tpu.core_type = #tpu.core_type<tc>, window_params = [{transform_indices = @transform_0, window_bounds = array<i64: 1, 8, 256>}, {pipeline_mode = #tpu.pipeline_mode<synchronous>, transform_indices = @transform_1, window_bounds = array<i64: 8, 2>}, {pipeline_mode = #tpu.pipeline_mode<synchronous>, transform_indices = @transform_2, window_bounds = array<i64: 1, 2>}, {pipeline_mode = #tpu.pipeline_mode<synchronous>, transform_indices = @transform_3, window_bounds = array<i64: 2, 8>}, {transform_indices = @transform_4, window_bounds = array<i64: 1, 8, 256>}]} {
    %c0 = arith.constant 0 : index
    %c0_0 = arith.constant 0 : index
    %c0_1 = arith.constant 0 : index
    %0 = vector.load %arg1[%c0, %c0_0, %c0_1] : memref<1x8x256xf32, #tpu.memory_space<vmem>>, vector<1x8x256xf32>
    %cst = arith.constant dense<0.000000e+00> : vector<1x8xf32>
    %1 = vector.multi_reduction <add>, %0, %cst [2] : vector<1x8x256xf32> to vector<1x8xf32>
    %cst_2 = arith.constant 3.906250e-03 : f32
    %2 = vector.broadcast %cst_2 : f32 to vector<1x8xf32>
    %3 = arith.mulf %1, %2 : vector<1x8xf32>
    %c0_3 = arith.constant 0 : index
    %c0_4 = arith.constant 0 : index
    %4 = vector.load %arg2[%c0_3, %c0_4] : memref<8x2xf32, #tpu.memory_space<vmem>>, vector<8x2xf32>
    %cst_5 = arith.constant dense<0.000000e+00> : vector<1x2xf32>
    %5 = tpu.matmul %3, %4, %cst_5 {dimension_numbers = #tpu.dot_dimension_numbers<[1], [0], [0], [1], [0, 0, 1, 1], [], []>} : vector<1x8xf32>, vector<8x2xf32>, vector<1x2xf32> -> vector<1x2xf32>
    %c0_6 = arith.constant 0 : index
    %c0_7 = arith.constant 0 : index
    %6 = vector.load %arg3[%c0_6, %c0_7] : memref<1x2xf32, #tpu.memory_space<vmem>>, vector<1x2xf32>
    %7 = arith.addf %5, %6 : vector<1x2xf32>
    %cst_8 = arith.constant 0.000000e+00 : f32
    %cst_9 = arith.constant 6.000000e+00 : f32
    %8 = vector.broadcast %cst_8 : f32 to vector<1x2xf32>
    %9 = arith.maximumf %8, %7 : vector<1x2xf32>
    %10 = vector.broadcast %cst_9 : f32 to vector<1x2xf32>
    %11 = arith.minimumf %10, %9 : vector<1x2xf32>
    %c0_10 = arith.constant 0 : index
    %c0_11 = arith.constant 0 : index
    %12 = vector.load %arg4[%c0_10, %c0_11] : memref<2x8xf32, #tpu.memory_space<vmem>>, vector<2x8xf32>
    %cst_12 = arith.constant dense<0.000000e+00> : vector<1x8xf32>
    %13 = tpu.matmul %11, %12, %cst_12 {dimension_numbers = #tpu.dot_dimension_numbers<[1], [0], [0], [1], [0, 0, 1, 1], [], []>} : vector<1x2xf32>, vector<2x8xf32>, vector<1x8xf32> -> vector<1x8xf32>
    %cst_13 = arith.constant 3.000000e+00 : f32
    %14 = vector.broadcast %cst_13 : f32 to vector<1x8xf32>
    %15 = arith.addf %13, %14 : vector<1x8xf32>
    %cst_14 = arith.constant 0.000000e+00 : f32
    %cst_15 = arith.constant 6.000000e+00 : f32
    %16 = vector.broadcast %cst_14 : f32 to vector<1x8xf32>
    %17 = arith.maximumf %16, %15 : vector<1x8xf32>
    %18 = vector.broadcast %cst_15 : f32 to vector<1x8xf32>
    %19 = arith.minimumf %18, %17 : vector<1x8xf32>
    %cst_16 = arith.constant 0.166666672 : f32
    %20 = vector.broadcast %cst_16 : f32 to vector<1x8xf32>
    %21 = arith.mulf %19, %20 : vector<1x8xf32>
    %22 = vector.shape_cast %21 : vector<1x8xf32> to vector<1x8x1xf32>
    %23 = vector.broadcast %22 : vector<1x8x1xf32> to vector<1x8x256xf32>
    %24 = arith.mulf %0, %23 : vector<1x8x256xf32>
    %c0_17 = arith.constant 0 : index
    %c0_18 = arith.constant 0 : index
    %c0_19 = arith.constant 0 : index
    %25 = vector.load %arg5[%c0_17, %c0_18, %c0_19] : memref<1x8x256xf32, #tpu.memory_space<vmem>>, vector<1x8x256xf32>
    tpu.vector_store %arg5[%c0_17, %c0_18, %c0_19], %24 {strides = array<i32>} : memref<1x8x256xf32, #tpu.memory_space<vmem>>, vector<1x8x256xf32>,
    return
  }
  func.func @transform_0(%arg0: i32) -> (i32, i32, i32) {
    %c0_i32 = arith.constant 0 : i32
    %c0_i32_0 = arith.constant 0 : i32
    %c0_i32_1 = arith.constant 0 : i32
    return %arg0, %c0_i32, %c0_i32_0 : i32, i32, i32
  }
  func.func @transform_1(%arg0: i32) -> (i32, i32) {
    %c0_i32 = arith.constant 0 : i32
    %c0_i32_0 = arith.constant 0 : i32
    %c0_i32_1 = arith.constant 0 : i32
    return %c0_i32, %c0_i32_0 : i32, i32
  }
  func.func @transform_2(%arg0: i32) -> (i32, i32) {
    %c0_i32 = arith.constant 0 : i32
    %c0_i32_0 = arith.constant 0 : i32
    %c0_i32_1 = arith.constant 0 : i32
    return %c0_i32, %c0_i32_0 : i32, i32
  }
  func.func @transform_3(%arg0: i32) -> (i32, i32) {
    %c0_i32 = arith.constant 0 : i32
    %c0_i32_0 = arith.constant 0 : i32
    %c0_i32_1 = arith.constant 0 : i32
    return %c0_i32, %c0_i32_0 : i32, i32
  }
  func.func @transform_4(%arg0: i32) -> (i32, i32, i32) {
    %c0_i32 = arith.constant 0 : i32
    %c0_i32_0 = arith.constant 0 : i32
    %c0_i32_1 = arith.constant 0 : i32
    return %arg0, %c0_i32, %c0_i32_0 : i32, i32, i32
  }
}

</mosaic_0001>

<bundles_post_ra>
// kernel: tpu_custom_call.1
= control target key start
LH: loop header
LB: loop body
LE: loop exit
PB: predicated region body
PF: predicated region fallthrough
CT: control target
= control target key end

     0   :  { %9 = vsyncpa [#allocation3], 0  ;;  %s864_s0 = inlined_call_operand.hbm [shape: f32[2,8,256], index: 0, kind: input, shape index: {}]   ;;  %s865_s1 = inlined_call_operand.vmem [shape: f32[8,2], index: 1, kind: input, shape index: {}]   ;;  %s866_s2 = inlined_call_operand.vmem [shape: f32[1,2], index: 2, kind: input, shape index: {}]   ;;  %s867_s3 = inlined_call_operand.vmem [shape: f32[2,8], index: 3, kind: input, shape index: {}]   ;;  %s868_s4 = inlined_call_operand.hbm [shape: f32[2,8,256], index: 4, kind: output, shape index: {}]  }
   0x1   :  { %11 = vsyncpa [#allocation3 + $0x1], 0 }
   0x2   :  { %12 = vsyncpa [#allocation4], 0 }
   0x3   :  { %14 = vsyncpa [#allocation4 + $0x1], 0  ;;  %s690_s15 = smov 0   ;;  %s692_s16 = smov 0  }
   0x4   :  { %s694_s17 = smov 0   ;;  %s696_s18 = smov 0  }
   0x5 LB: > { %s711_s19 = sadd.s32 4294967295, %s659_s18   ;;  %s482_s20 = sadd.s32 4294967294, %s659_s18   ;;  %s659_s18 = sphi %s696_s18, %s883_s18   ;;  %s655_s17 = sphi %s694_s17, %s882_s17   ;;  %s651_s16 = sphi %s692_s16, %s881_s16   ;;  %s647_s15 = sphi %s690_s15, %s880_s15  }
   0x6   : > { %s715_s21 = sadd.s32 1, %s659_s18   ;;  %s27_s22 = sadd.s32 1, %s655_s17 }
   0x7   : > { %s24_s23 = ssub.s32 %s659_s18, %s715_s21  ;;  %p34_p0 = scmp.ne.s32.totalorder %s655_s17, %s651_s16 }
   0x8   : > { %p25_p1 = scmp.eq.s32.totalorder %s24_s23, 0  ;;  %p35_p2 = scmp.eq.s32.totalorder %s659_s18, 0 }
   0x9   : > { %p40_p3 = scmp.ne.s32.totalorder %s651_s16, %s647_s15  ;;  %p41_p4 = scmp.eq.s32.totalorder %s711_s19, 0 }
   0xa   : > { %s727_s24 = scalar_select %p25_p1, %s655_s17, %s27_s22  }
   0xb   : > { %p729_p5 = por %p35_p2, %p34_p0  ;;  %p733_p6 = por %p41_p4, %p40_p3 }
   0xc   : > { %p127_p7 = scmp.eq.s32.totalorder %s711_s19, 1  ;;  %p133_p8 = scmp.eq.s32.totalorder %s482_s20, 1 }
   0xd   : > { %p527_p10 = scmp.lt.s32.totalorder %s659_s18, 2  ;;  %s162_s29 = sand.u32 1, %s655_s17  }
   0xe   : > { %p740_p11 = por %p127_p7, %p34_p0  ;;  %p744_p12 = por %p133_p8, %p40_p3 }
   0xf   : > { %s499_s30 = sshll.u32 %s659_s18, 8  ;;  %s485_s5 = sshll.u32 %s162_s29, 4 }
  0x10   : > { %s872_s27 = scalar_select %p740_p11, 1, 0 }
  0x11   : > { %s873_s28 = scalar_select %p744_p12, 1, 0 }
  0x12   : > { %s753_s8 = scalar_lea.hbm %s864_s0, %s499_s30  ;;  %s166_s9 = scalar_lea.vmem [#allocation2], %s485_s5 }
  0x13   : > { %s174_s10 = sshll.u32 %s166_s9, 4  ;;  %p757_p13 = pnand %p527_p10, %p729_p5  ;;  %s761_s10 = int_to_ptr.vmem [resolvable:$true] %s174_s10 }
  0x14   : > { %s163_s12 = scalar_lea.sflag [#allocation3], %s162_s29  ;;  %s563_s13 = scalar_lea.hbm %s753_s8, 256 }
  0x15   : > { %p564_p2 = scmp.ne.s32.totalorder %s753_s8, %s563_s13  ;;  %p565_p3 = pneg %p757_p13 }
  0x16   : > { %s568_s22 = scalar_lea.hbm %s864_s0, 512  ;;  %p569_p5 = scmp.lt.u32.totalorder %s753_s8, %s864_s0 }
  0x17   : > { %p566_p4 = pnand %p565_p3, %p564_p2  ;;  %p570_p8 = scmp.lt.u32.totalorder %s568_s22, %s563_s13 }
  0x18   : > { %p572_p9 = scmp.lt.u32.totalorder %s563_s13, %s753_s8 }
  0x19   : > { %p567_p7 = pneg %p566_p4  ;;  %p571_p10 = por %p570_p8, %p569_p5 }
  0x1b   : > { %p573_p0 = por %p572_p9, %p571_p10 }
  0x1d   : > { %p574_p1 = pnand %p573_p0, %p567_p7 }
  0x1f   : > { %577 = shalt.err (!%p574_p1)
}
  0x20   : > { %s578_s29 = scalar_lea.vmem %s761_s10, 256  ;;  %s661_s30 = smov [#allocation2]  }
  0x21   : > { %p579_p2 = scmp.ne.s32.totalorder %s761_s10, %s578_s29  ;;  %s583_s5 = sshll.u32 %s661_s30, 4  ;;  %s584_s5 = int_to_ptr.vmem [resolvable:$false] %s583_s5 }
  0x22   : > { %s585_s6 = scalar_lea.vmem %s584_s5, 512  ;;  %p586_p11 = scmp.lt.s32.totalorder %s761_s10, %s584_s5 }
  0x23   : > { %p581_p4 = pnand %p579_p2, %p565_p3  ;;  %p587_p5 = scmp.lt.s32.totalorder %s585_s6, %s578_s29 }
  0x25   : > { %p582_p12 = pneg %p581_p4  ;;  %p588_p8 = por %p587_p5, %p586_p11 }
  0x27   : > { %p589_p9 = pnand %p588_p8, %p582_p12 }
  0x29   : > { %592 = shalt.err (!%p589_p9)
}
  0x2a   : > { %522 = dma.hbm_to_vmem [thread:$0]  (!%p757_p13), %s753_s8, 256, %s761_s10, %s163_s12  }
  0x2b   : > { %p875_p0 = scmp.lt.s32.totalorder %s659_s18, 3  ;;  %p876_p1 = scmp.ge.s32.totalorder %s659_s18, 1 }
  0x2d   : > { %p180_p3 = pnand %p876_p1, %p875_p0 }
  0x2e   : > { %s795_s7 = sand.u32 (!%p180_p3), 1, %s651_s16  }
  0x2f   : > { %183 = sbr.rel (%p180_p3) target bundleno = 775 (0x307), region = 36  ;;  %s489_s9 = sshll.u32 (!%p180_p3), %s795_s7, 4 }
  0x30   : > { %s186_s13 = scalar_lea.sflag (!%p180_p3), [#allocation3], %s795_s7  ;;  %s189_s11 = scalar_lea.vmem (!%p180_p3), [#allocation2], %s489_s9 }
  0x36   : > { %638 = dma.done.wait (%p733_p6), %s186_s13, 256  }
  0x37   : > { %640 = vsyncadd (%p733_p6), %s186_s13, 4294967040  ;;  %v214_v0 = vld [vmem:[%s189_s11] sm:$0xff]  ;;  %v215_v1 = vld [vmem:[%s189_s11 + $0x8] sm:$0xff]  ;;  %v662_v3 = vmov 0.0   ;;  %vm663_vm0 = vmmov 0   ;;  %v223_v5 = vlaneseq  ;;  %vm229_vm1 = vcmask 64512  }
  0x38   : > { %v216_v2 = vadd.f32 %v215_v1, %v214_v0  ;;  %505 = vmatprep.subr.mxu0 %v662_v3  ;;  %v220_v4 = vld [vmem:[%s865_s1] sm:$0xff]  ;;  %510 = vmatprep.subr.mxu1 %v662_v3  ;;  %vm309_vm2 = vcmask 1041408   ;;  %vm305_vm3 = vcmask 15360   ;;  %s500_s22 = sshll.u32 %s711_s19, 8  ;;  %s213_s23 = scalar_lea.vmem [#allocation5], %s489_s9 }
  0x39   : > { %506 = vmatpush3.msra.mxu0 %v220_v4  ;;  %507 = vmatprep.mubr.msk.f32.mxu0 %vm663_vm0, %v662_v3  ;;  %v224_v6 = vand.u32 127, %v223_v5  ;;  %v226_v7 = vshrl.u32 %v223_v5, 7  ;;  %v304_v12 = vld [vmem:[%s867_s3] sm:$0x3]  ;;  %s412_s25 = sshll.u32 %s213_s23, 4  ;;  %s820_s5 = scalar_lea.hbm %s868_s4, %s500_s22  ;;  %s822_s25 = int_to_ptr.vmem [resolvable:$true] %s412_s25 }
  0x3a   : > { %217 = vadd.xlane.f32.xlu0 %v216_v2  ;;  %512 = vmatprep.mubr.msk.f32.mxu1 %vm663_vm0, %v662_v3  ;;  %v221_v13 = vld [vmem:[%s866_s2] sm:$0x1]  ;;  %s398_s6 = scalar_lea.sflag [#allocation4], %s795_s7  ;;  %s593_s19 = scalar_lea.vmem %s822_s25, 256 }
  0x3b   : > { %v227_v8 = vsub.s32 %v224_v6, %v226_v7  ;;  %511 = vmatpush3.msk.msra.mxu1 %vm309_vm2, %v304_v12  ;;  %v388_v24 = vsub.s32 0, %v226_v7  ;;  %p594_p6 = scmp.ne.s32.totalorder %s822_s25, %s593_s19  ;;  %p877_p11 = scmp.ne.s32.totalorder %s872_s27, 0 }
  0x3c   : > { %s664_s9 = smov [#allocation5]  }
  0x3d   : > { %p595_p12 = pnand %p594_p6, %p877_p11  ;;  %s597_s13 = sshll.u32 %s664_s9, 4  ;;  %s598_s13 = int_to_ptr.vmem [resolvable:$false] %s597_s13 }
  0x3e   : > { %s599_s11 = scalar_lea.vmem %s598_s13, 512  ;;  %p600_p7 = scmp.lt.s32.totalorder %s822_s25, %s598_s13 }
  0x3f   : > { %p596_p13 = pneg %p595_p12  ;;  %p601_p10 = scmp.lt.s32.totalorder %s599_s11, %s593_s19 }
  0x41   : > { %p602_p2 = por %p601_p10, %p600_p7 }
  0x43   : > { %p603_p4 = pnand %p602_p2, %p596_p13 }
  0xc7   : > { %v218_v9 = vpop.xlane.xlu0 %217 }
  0xc8   : > { %v219_v10 = vmul.f32 0.00390625, %v218_v9 }
  0xca   : > { %v228_v11 = vrot.slane %v219_v10, %v227_v8 }
  0xcc   : > { %508 = vmatmul.mubr.msk.f32.vlgmr.msra.gmra.mrb[0].mxu0 %vm229_vm1, %v228_v11 }
 0x19f   : > { %v298_v14 = vpop.f32.mrb[0].mxu0 }
 0x1a0   : > { %v299_v15 = vadd.f32 %v298_v14, %v221_v13  ;;  %v509_v16 = vpop.f32.mrb[1].mxu0 }
 0x1a2   : > { %v302_v17 = vmax.f32 %v299_v15, 0.0 }
 0x1a4   : > { %v303_v18 = vmin.f32 %v302_v17, 6.0 }
 0x1a6   : > { %513 = vmatmul.mubr.msk.f32.vlgmr.msra.gmra.mrb[0].mxu1 %vm305_vm3, %v303_v18 }
 0x279   : > { %v379_v19 = vpop.f32.mrb[0].mxu1 }
 0x27a   : > { %v380_v20 = vadd.f32 3.0, %v379_v19  ;;  %v514_v21 = vpop.f32.mrb[1].mxu1 }
 0x27c   : > { %v383_v22 = vmax.f32 %v380_v20, 0.0 }
 0x27e   : > { %v384_v23 = vmin.f32 %v383_v22, 6.0 }
 0x280   : > { %v385_v25 = vmul.f32 0.16666667, %v384_v23 }
 0x282   : > { %v389_v26 = vrot.slane %v385_v25, %v388_v24 }
 0x284   : > { %391 = vbcast.lane.b32.xlu0 %v389_v26, 256 }
 0x2f6   : > { %v392_v27 = vpop.permute.xlu0 %391 }
 0x2f7   : > { %v393_v28 = vmul.f32 %v392_v27, %v214_v0  ;;  %v394_v29 = vmul.f32 %v392_v27, %v215_v1 }
 0x2f9   : > { %395 = vst [vmem:[%s213_s23] sm:$0xff] %v393_v28  ;;  %396 = vst [vmem:[%s213_s23 + $0x8] sm:$0xff] %v394_v29 }
 0x2fa   : > { %606 = shalt.err (!%p603_p4)
}
 0x2fb   : > { %s607_s7 = scalar_lea.hbm %s820_s5, 256  ;;  %s611_s26 = scalar_lea.hbm %s868_s4, 512 }
 0x2fc   : > { %p608_p5 = scmp.ne.s32.totalorder %s820_s5, %s607_s7  ;;  %p612_p0 = scmp.lt.u32.totalorder %s820_s5, %s868_s4 }
 0x2fd   : > { %p613_p1 = scmp.lt.u32.totalorder %s611_s26, %s607_s7  ;;  %p615_p6 = scmp.lt.u32.totalorder %s607_s7, %s820_s5 }
 0x2fe   : > { %p609_p8 = pnand %p608_p5, %p877_p11 }
 0x2ff   : > { %p614_p3 = por %p613_p1, %p612_p0 }
 0x300   : > { %p610_p9 = pneg %p609_p8 }
 0x301   : > { %p616_p12 = por %p615_p6, %p614_p3 }
 0x303   : > { %p617_p13 = pnand %p616_p12, %p610_p9 }
 0x305   : > { %620 = shalt.err (!%p617_p13)
}
 0x306   : > { %517 = dma.vmem_to_hbm [thread:$0]  (%p877_p11), %s822_s25, 256, %s820_s5, %s398_s6  }
 0x307 PF: > { %s424_s20 = sand.u32 1, %s647_s15   ;;  %p878_p7 = scmp.ne.s32.totalorder %s873_s28, 0 }
 0x308   : > { %p879_p10 = scmp.ge.s32.totalorder %s659_s18, 2  ;;  %s425_s22 = scalar_lea.sflag [#allocation4], %s424_s20 }
 0x30a   : > { %p524_p2 = pnand %p879_p10, %p878_p7 }
 0x30c   : > { %642 = dma.done.wait (!%p524_p2), %s425_s22, 256  }
 0x30d   : > { %644 = vsyncadd (!%p524_p2), %s425_s22, 4294967040  ;;  %p17_p4 = scmp.ge.s32.totalorder %s715_s21, 4   ;;  %s880_s15 = smov %s651_s16 }
 0x30e   : > { %s881_s16 = smov %s655_s17  ;;  %s882_s17 = smov %s727_s24 }
 0x30f   : > { %s883_s18 = smov %s715_s21  ;;  %19 = sbr.rel (!%p17_p4) target bundleno = 5 (0x5), region = 81 }
 0x316   :  { %430 = vsyncpa [#allocation3], 1 }
 0x317   :  { %432 = vsyncpa [#allocation3 + $0x1], 1 }
 0x318   :  { %433 = vsyncpa [#allocation4], 1 }
 0x319   :  { %435 = vsyncpa [#allocation4 + $0x1], 1 }

</bundles_post_ra>
